<compile_context>
chip_gen: v7x
topology: tpu7x:2x2x1
jax: 0.10.0
libtpu: 0.0.40
codegen_flags: <defaults>
</compile_context>

<pallas_src>
import functools

import jax
import jax.numpy as jnp
from jax.experimental import pallas as pl
from jax.experimental.pallas import tpu as pltpu

# "network" hyper-parameters (deterministic, synthetic)
HIDDEN = 32
LAMBDA_RESIDUAL = 1.0        # network.lambda_residual
LAMBDA_REG = 1e-4            # network.regularization_param
ORDER_REGULARIZER = 2        # network.kernel_regularizer (specialized: p = 2)

LANES = 128                  # TPU vreg lane count; batch is padded to this
N_OUT = 6                    # loss_v, loss_vars, loss_res, loss_bound, loss_ini, nan_flag


# ----------------------------------------------------------------------------
# Fused kernel: lane-dense MLP forward on all points + all loss reductions
# ----------------------------------------------------------------------------
def fused_pinn_loss_kernel(data_ref, sp_ref, w2t_ref, out_ref, *, n_b, n_i, n_f):
    data = data_ref[...]             # (3, N)  rows: t, x, target (lane = point)
    sp = sp_ref[...]                 # (H, 6)  cols: w1[0,:], w1[1,:], b1, b2, w3, b3
    w2t = w2t_ref[...]               # (H, H)  = w2.T

    x0 = data[0:1, :]                # (1, N)
    x1 = data[1:2, :]                # (1, N)
    tgt = data[2:3, :]               # (1, N)

    # Layer 1 (K=2 contraction): VPU broadcast-MAC, batch on lanes, H on sublanes.
    h1 = jnp.tanh(sp[:, 0:1] * x0 + sp[:, 1:2] * x1 + sp[:, 2:3])          # (H, N)

    # Layer 2: the only real matmul -> MXU, f32 accumulation.
    h2 = jnp.tanh(
        jnp.dot(w2t, h1, preferred_element_type=jnp.float32) + sp[:, 3:4]  # (H, N)
    )

    # Layer 3 (output width 1): sublane reduction + bias broadcast.
    pred = jnp.sum(h2 * sp[:, 4:5], axis=0, keepdims=True) + sp[0:1, 5:6]  # (1, N)

    # Group masks along the lane (batch) axis: [boundary | initial | colloc | pad].
    lane = jax.lax.broadcasted_iota(jnp.int32, pred.shape, 1)
    d = pred - tgt
    d2 = d * d
    loss_bound = jnp.sum(jnp.where(lane < n_b, d2, 0.0)) / n_b
    loss_ini = jnp.sum(jnp.where((lane >= n_b) & (lane < n_b + n_i), d2, 0.0)) / n_i
    # TODO(synk): Ec.compute_res emulated as raw net output at collocation points.
    loss_res = jnp.sum(
        jnp.where((lane >= n_b + n_i) & (lane < n_b + n_i + n_f), pred * pred, 0.0)
    ) / n_f

    # L2 weight-norm regularization (weights only, no biases; p=2 specialized).
    w1_cols = sp[:, 0:2]
    w3_col = sp[:, 4:5]
    loss_reg = (
        jnp.sqrt(jnp.sum(w1_cols * w1_cols))
        + jnp.sqrt(jnp.sum(w2t * w2t))          # ||w2.T||_F == ||w2||_F
        + jnp.sqrt(jnp.sum(w3_col * w3_col))
    )

    loss_vars = loss_ini + loss_bound
    loss_v = LAMBDA_RESIDUAL * loss_vars + 2.0 * loss_res + LAMBDA_REG * loss_reg

    # In-kernel NaN flag from the already-reduced scalars (a NaN in any
    # boundary / initial prediction propagates into its mean) — replaces the
    # torch host-side asserts without extra full-array passes.
    nan_flag = jnp.isnan(loss_bound + loss_ini).astype(jnp.float32)

    # Pack the scalars into one lane-dense (1, 128) block -> single unmasked store.
    vals = (loss_v, loss_vars, loss_res, loss_bound, loss_ini, nan_flag)
    out_lane = jax.lax.broadcasted_iota(jnp.int32, out_ref.shape, 1)
    packed = jnp.zeros(out_ref.shape, jnp.float32)
    for i, v in enumerate(vals):
        packed = jnp.where(out_lane == i, v, packed)
    out_ref[...] = packed


# ----------------------------------------------------------------------------
# One-time data prep (hoisted out of the per-step function): the training
# points are fixed across iterations, so concat / transpose / target packing
# happens exactly once.
# ----------------------------------------------------------------------------
def prepare_data(x_u_train, u_train, x_b_train, u_b_train, x_f_train):
    n_b = int(x_b_train.shape[0])
    n_i = int(x_u_train.shape[0])
    n_f = int(x_f_train.shape[0])
    n_tot = n_b + n_i + n_f
    n = ((n_tot + LANES - 1) // LANES) * LANES   # pad batch to a lane multiple

    # Ec.apply_bc / Ec.apply_ic / Ec.compute_res: one concatenated forward pass.
    x_all = jnp.concatenate([x_b_train, x_u_train, x_f_train], axis=0)      # (n_tot, 2)
    tgt = jnp.concatenate(
        [u_b_train[:, 0], u_train[:, 0], jnp.zeros((n_f,), jnp.float32)], axis=0
    )
    data = jnp.zeros((3, n), jnp.float32)
    data = data.at[0:2, :n_tot].set(x_all.T.astype(jnp.float32))
    data = data.at[2, :n_tot].set(tgt.astype(jnp.float32))
    return data, (n_b, n_i, n_f)


# ----------------------------------------------------------------------------
# Full CustomLoss.forward equivalent (jit-wrapped, single pallas_call)
# ----------------------------------------------------------------------------
@functools.partial(jax.jit, static_argnames=("n_b", "n_i", "n_f"))
def custom_loss_forward(params, data, *, n_b, n_i, n_f):
    w1, b1, w2, b2, w3, b3 = params
    hidden = w1.shape[1]

    # Pack the five small parameter tensors into one (H, 6) array (single DMA);
    # pre-transpose w2 for the lane-dense layout.  Fused by XLA, tiny.
    sp = jnp.stack(
        [w1[0, :], w1[1, :], b1[0, :], b2[0, :], w3[:, 0],
         jnp.broadcast_to(b3[0, 0], (hidden,))],
        axis=1,
    ).astype(jnp.float32)                                                    # (H, 6)
    w2t = w2.T.astype(jnp.float32)                                           # (H, H)

    kernel = functools.partial(fused_pinn_loss_kernel, n_b=n_b, n_i=n_i, n_f=n_f)
    vmem = pl.BlockSpec(memory_space=pltpu.MemorySpace.VMEM)
    packed = pl.pallas_call(
        kernel,
        out_shape=jax.ShapeDtypeStruct((1, LANES), jnp.float32),
        in_specs=[vmem, vmem, vmem],
        out_specs=vmem,
    )(data, sp, w2t)

    loss_v = packed[0, 0]
    loss_vars = packed[0, 1]
    loss_res = packed[0, 2]
    loss_bound = packed[0, 3]
    loss_ini = packed[0, 4]
    nan_flag = packed[0, 5]
    return loss_v, loss_vars, loss_res, loss_bound, loss_ini, nan_flag


# ----------------------------------------------------------------------------
def init_params(key, hidden=HIDDEN):
    k1, k2, k3 = jax.random.split(key, 3)
    w1 = jax.random.normal(k1, (2, hidden), jnp.float32) * 0.5
    b1 = jnp.zeros((1, hidden), jnp.float32)
    w2 = jax.random.normal(k2, (hidden, hidden), jnp.float32) * 0.2
    b2 = jnp.zeros((1, hidden), jnp.float32)
    w3 = jax.random.normal(k3, (hidden, 1), jnp.float32) * 0.2
    b3 = jnp.zeros((1, 1), jnp.float32)
    return (w1, b1, w2, b2, w3, b3)


if __name__ == "__main__":
    import numpy as np

    key = jax.random.PRNGKey(0)
    kp, ki, kiu, kb, kbu, kf = jax.random.split(key, 6)

    params = init_params(kp)

    n_ini, n_b, n_f = 32, 32, 64
    x_u_train = jax.random.uniform(ki, (n_ini, 2), jnp.float32)   # initial points (t, x)
    u_train = jax.random.normal(kiu, (n_ini, 1), jnp.float32)     # initial targets
    x_b_train = jax.random.uniform(kb, (n_b, 2), jnp.float32)     # boundary points
    u_b_train = jax.random.normal(kbu, (n_b, 1), jnp.float32)     # boundary targets
    x_f_train = jax.random.uniform(kf, (n_f, 2), jnp.float32)     # collocation points

    # One-time data prep (fixed across training steps — hoisted out of the step).
    data, (nb, ni, nf) = prepare_data(
        x_u_train, u_train, x_b_train, u_b_train, x_f_train
    )

    outs = custom_loss_forward(params, data, n_b=nb, n_i=ni, n_f=nf)
    jax.block_until_ready(outs)
    loss_v, loss_vars, loss_res, loss_b, loss_i, nan_flag = (
        np.asarray(o) for o in outs
    )

    # Torch `assert not torch.isnan(...).any()` equivalent — checked host-side
    # only after results are already fetched (no extra device sync, jit-safe).
    assert float(nan_flag) == 0.0

    # mirror the torch module's print
    print(
        "Total Loss:", np.round(float(loss_v), 6),
        "| Boundary Loss:", np.round(np.log10(float(loss_b)), 4),
        "| Initial Loss:", np.round(np.log10(float(loss_i)), 4),
        "| PDE Loss:", np.round(np.log10(float(loss_res)), 6), "\n",
    )

    print("KERNEL_OK")
</pallas_src>

<mosaic_0001>
module attributes {stable_mosaic.version = 11 : i64} {
  func.func @fused_pinn_loss_kernel(%arg0: memref<3x128xf32, #tpu.memory_space<vmem>>, %arg1: memref<32x6xf32, #tpu.memory_space<vmem>>, %arg2: memref<32x32xf32, #tpu.memory_space<vmem>>, %arg3: memref<1x128xf32, #tpu.memory_space<vmem>>) attributes {dimension_semantics = [], scalar_prefetch = 0 : i64, scratch_operands = 0 : i64, tpu.core_type = #tpu.core_type<tc>} {
    %c0 = arith.constant 0 : index
    %c0_0 = arith.constant 0 : index
    %0 = vector.load %arg0[%c0, %c0_0] : memref<3x128xf32, #tpu.memory_space<vmem>>, vector<3x128xf32>
    %c0_1 = arith.constant 0 : index
    %c0_2 = arith.constant 0 : index
    %1 = vector.load %arg1[%c0_1, %c0_2] : memref<32x6xf32, #tpu.memory_space<vmem>>, vector<32x6xf32>
    %c0_3 = arith.constant 0 : index
    %c0_4 = arith.constant 0 : index
    %2 = vector.load %arg2[%c0_3, %c0_4] : memref<32x32xf32, #tpu.memory_space<vmem>>, vector<32x32xf32>
    %3 = vector.extract_strided_slice %0 {offsets = [0, 0], sizes = [1, 128], strides = [1, 1]} : vector<3x128xf32> to vector<1x128xf32>
    %4 = vector.extract_strided_slice %0 {offsets = [1, 0], sizes = [1, 128], strides = [1, 1]} : vector<3x128xf32> to vector<1x128xf32>
    %5 = vector.extract_strided_slice %0 {offsets = [2, 0], sizes = [1, 128], strides = [1, 1]} : vector<3x128xf32> to vector<1x128xf32>
    %6 = vector.extract_strided_slice %1 {offsets = [0, 0], sizes = [32, 1], strides = [1, 1]} : vector<32x6xf32> to vector<32x1xf32>
    %7 = vector.broadcast %6 : vector<32x1xf32> to vector<32x128xf32>
    %8 = vector.broadcast %3 : vector<1x128xf32> to vector<32x128xf32>
    %9 = arith.mulf %7, %8 : vector<32x128xf32>
    %10 = vector.extract_strided_slice %1 {offsets = [0, 1], sizes = [32, 1], strides = [1, 1]} : vector<32x6xf32> to vector<32x1xf32>
    %11 = vector.broadcast %10 : vector<32x1xf32> to vector<32x128xf32>
    %12 = vector.broadcast %4 : vector<1x128xf32> to vector<32x128xf32>
    %13 = arith.mulf %11, %12 : vector<32x128xf32>
    %14 = arith.addf %9, %13 : vector<32x128xf32>
    %15 = vector.extract_strided_slice %1 {offsets = [0, 2], sizes = [32, 1], strides = [1, 1]} : vector<32x6xf32> to vector<32x1xf32>
    %16 = vector.broadcast %15 : vector<32x1xf32> to vector<32x128xf32>
    %17 = arith.addf %14, %16 : vector<32x128xf32>
    %18 = math.tanh %17 : vector<32x128xf32>
    %cst = arith.constant dense<0.000000e+00> : vector<32x128xf32>
    %19 = tpu.matmul %2, %18, %cst {dimension_numbers = #tpu.dot_dimension_numbers<[1], [0], [0], [1], [0, 0, 1, 1], [], []>} : vector<32x32xf32>, vector<32x128xf32>, vector<32x128xf32> -> vector<32x128xf32>
    %20 = vector.extract_strided_slice %1 {offsets = [0, 3], sizes = [32, 1], strides = [1, 1]} : vector<32x6xf32> to vector<32x1xf32>
    %21 = vector.broadcast %20 : vector<32x1xf32> to vector<32x128xf32>
    %22 = arith.addf %19, %21 : vector<32x128xf32>
    %23 = math.tanh %22 : vector<32x128xf32>
    %24 = vector.extract_strided_slice %1 {offsets = [0, 4], sizes = [32, 1], strides = [1, 1]} : vector<32x6xf32> to vector<32x1xf32>
    %25 = vector.broadcast %24 : vector<32x1xf32> to vector<32x128xf32>
    %26 = arith.mulf %23, %25 : vector<32x128xf32>
    %cst_5 = arith.constant dense<0.000000e+00> : vector<128xf32>
    %27 = vector.multi_reduction <add>, %26, %cst_5 [0] : vector<32x128xf32> to vector<128xf32>
    %28 = vector.shape_cast %27 : vector<128xf32> to vector<1x128xf32>
    %29 = vector.extract_strided_slice %1 {offsets = [0, 5], sizes = [1, 1], strides = [1, 1]} : vector<32x6xf32> to vector<1x1xf32>
    %30 = vector.broadcast %29 : vector<1x1xf32> to vector<1x128xf32>
    %31 = arith.addf %28, %30 : vector<1x128xf32>
    %32 = tpu.iota {dimensions = array<i32: 1>} : vector<1x128xi32>
    %33 = arith.subf %31, %5 : vector<1x128xf32>
    %34 = arith.mulf %33, %33 : vector<1x128xf32>
    %c32_i32 = arith.constant 32 : i32
    %35 = vector.broadcast %c32_i32 : i32 to vector<1x128xi32>
    %36 = arith.cmpi slt, %32, %35 : vector<1x128xi32>
    %cst_6 = arith.constant 0.000000e+00 : f32
    %37 = vector.broadcast %cst_6 : f32 to vector<1x128xf32>
    %38 = arith.select %36, %34, %37 : vector<1x128xi1>, vector<1x128xf32>
    %39 = vector.shape_cast %38 : vector<1x128xf32> to vector<1x1x128xf32>
    %cst_7 = arith.constant dense<0.000000e+00> : vector<1xf32>
    %40 = vector.multi_reduction <add>, %39, %cst_7 [1, 2] : vector<1x1x128xf32> to vector<1xf32>
    %41 = vector.shape_cast %40 : vector<1xf32> to vector<1x1x1xf32>
    %42 = vector.extract %41[0, 0, 0] : f32 from vector<1x1x1xf32>
    %cst_8 = arith.constant 3.200000e+01 : f32
    %43 = arith.divf %42, %cst_8 : f32
    %c32_i32_9 = arith.constant 32 : i32
    %44 = vector.broadcast %c32_i32_9 : i32 to vector<1x128xi32>
    %45 = arith.cmpi sge, %32, %44 : vector<1x128xi32>
    %c64_i32 = arith.constant 64 : i32
    %46 = vector.broadcast %c64_i32 : i32 to vector<1x128xi32>
    %47 = arith.cmpi slt, %32, %46 : vector<1x128xi32>
    %48 = arith.andi %45, %47 : vector<1x128xi1>
    %cst_10 = arith.constant 0.000000e+00 : f32
    %49 = vector.broadcast %cst_10 : f32 to vector<1x128xf32>
    %50 = arith.select %48, %34, %49 : vector<1x128xi1>, vector<1x128xf32>
    %51 = vector.shape_cast %50 : vector<1x128xf32> to vector<1x1x128xf32>
    %cst_11 = arith.constant dense<0.000000e+00> : vector<1xf32>
    %52 = vector.multi_reduction <add>, %51, %cst_11 [1, 2] : vector<1x1x128xf32> to vector<1xf32>
    %53 = vector.shape_cast %52 : vector<1xf32> to vector<1x1x1xf32>
    %54 = vector.extract %53[0, 0, 0] : f32 from vector<1x1x1xf32>
    %cst_12 = arith.constant 3.200000e+01 : f32
    %55 = arith.divf %54, %cst_12 : f32
    %c64_i32_13 = arith.constant 64 : i32
    %56 = vector.broadcast %c64_i32_13 : i32 to vector<1x128xi32>
    %57 = arith.cmpi sge, %32, %56 : vector<1x128xi32>
    %c128_i32 = arith.constant 128 : i32
    %58 = vector.broadcast %c128_i32 : i32 to vector<1x128xi32>
    %59 = arith.cmpi slt, %32, %58 : vector<1x128xi32>
    %60 = arith.andi %57, %59 : vector<1x128xi1>
    %61 = arith.mulf %31, %31 : vector<1x128xf32>
    %cst_14 = arith.constant 0.000000e+00 : f32
    %62 = vector.broadcast %cst_14 : f32 to vector<1x128xf32>
    %63 = arith.select %60, %61, %62 : vector<1x128xi1>, vector<1x128xf32>
    %64 = vector.shape_cast %63 : vector<1x128xf32> to vector<1x1x128xf32>
    %cst_15 = arith.constant dense<0.000000e+00> : vector<1xf32>
    %65 = vector.multi_reduction <add>, %64, %cst_15 [1, 2] : vector<1x1x128xf32> to vector<1xf32>
    %66 = vector.shape_cast %65 : vector<1xf32> to vector<1x1x1xf32>
    %67 = vector.extract %66[0, 0, 0] : f32 from vector<1x1x1xf32>
    %cst_16 = arith.constant 6.400000e+01 : f32
    %68 = arith.divf %67, %cst_16 : f32
    %69 = vector.extract_strided_slice %1 {offsets = [0, 0], sizes = [32, 2], strides = [1, 1]} : vector<32x6xf32> to vector<32x2xf32>
    %70 = vector.extract_strided_slice %1 {offsets = [0, 4], sizes = [32, 1], strides = [1, 1]} : vector<32x6xf32> to vector<32x1xf32>
    %71 = arith.mulf %69, %69 : vector<32x2xf32>
    %72 = vector.shape_cast %71 : vector<32x2xf32> to vector<1x32x2xf32>
    %cst_17 = arith.constant dense<0.000000e+00> : vector<1xf32>
    %73 = vector.multi_reduction <add>, %72, %cst_17 [1, 2] : vector<1x32x2xf32> to vector<1xf32>
    %74 = vector.shape_cast %73 : vector<1xf32> to vector<1x1x1xf32>
    %75 = vector.extract %74[0, 0, 0] : f32 from vector<1x1x1xf32>
    %76 = math.sqrt %75 : f32
    %77 = arith.mulf %2, %2 : vector<32x32xf32>
    %78 = vector.shape_cast %77 : vector<32x32xf32> to vector<1x32x32xf32>
    %cst_18 = arith.constant dense<0.000000e+00> : vector<1xf32>
    %79 = vector.multi_reduction <add>, %78, %cst_18 [1, 2] : vector<1x32x32xf32> to vector<1xf32>
    %80 = vector.shape_cast %79 : vector<1xf32> to vector<1x1x1xf32>
    %81 = vector.extract %80[0, 0, 0] : f32 from vector<1x1x1xf32>
    %82 = math.sqrt %81 : f32
    %83 = arith.addf %76, %82 : f32
    %84 = arith.mulf %70, %70 : vector<32x1xf32>
    %85 = vector.shape_cast %84 : vector<32x1xf32> to vector<1x32x1xf32>
    %cst_19 = arith.constant dense<0.000000e+00> : vector<1xf32>
    %86 = vector.multi_reduction <add>, %85, %cst_19 [1, 2] : vector<1x32x1xf32> to vector<1xf32>
    %87 = vector.shape_cast %86 : vector<1xf32> to vector<1x1x1xf32>
    %88 = vector.extract %87[0, 0, 0] : f32 from vector<1x1x1xf32>
    %89 = math.sqrt %88 : f32
    %90 = arith.addf %83, %89 : f32
    %91 = arith.addf %55, %43 : f32
    %cst_20 = arith.constant 1.000000e+00 : f32
    %92 = arith.mulf %cst_20, %91 : f32
    %cst_21 = arith.constant 2.000000e+00 : f32
    %93 = arith.mulf %cst_21, %68 : f32
    %94 = arith.addf %92, %93 : f32
    %cst_22 = arith.constant 9.99999974E-5 : f32
    %95 = arith.mulf %cst_22, %90 : f32
    %96 = arith.addf %94, %95 : f32
    %97 = arith.addf %43, %55 : f32
    %98 = arith.cmpf one, %97, %97 : f32
    %99 = arith.extui %98 : i1 to i32
    %100 = arith.sitofp %99 : i32 to f32
    %101 = tpu.iota {dimensions = array<i32: 1>} : vector<1x128xi32>
    %cst_23 = arith.constant 0.000000e+00 : f32
    %102 = vector.broadcast %cst_23 : f32 to vector<1x128xf32>
    %c0_i32 = arith.constant 0 : i32
    %103 = vector.broadcast %c0_i32 : i32 to vector<1x128xi32>
    %104 = arith.cmpi eq, %101, %103 : vector<1x128xi32>
    %105 = vector.broadcast %96 : f32 to vector<1x128xf32>
    %106 = arith.select %104, %105, %102 : vector<1x128xi1>, vector<1x128xf32>
    %c1_i32 = arith.constant 1 : i32
    %107 = vector.broadcast %c1_i32 : i32 to vector<1x128xi32>
    %108 = arith.cmpi eq, %101, %107 : vector<1x128xi32>
    %109 = vector.broadcast %91 : f32 to vector<1x128xf32>
    %110 = arith.select %108, %109, %106 : vector<1x128xi1>, vector<1x128xf32>
    %c2_i32 = arith.constant 2 : i32
    %111 = vector.broadcast %c2_i32 : i32 to vector<1x128xi32>
    %112 = arith.cmpi eq, %101, %111 : vector<1x128xi32>
    %113 = vector.broadcast %68 : f32 to vector<1x128xf32>
    %114 = arith.select %112, %113, %110 : vector<1x128xi1>, vector<1x128xf32>
    %c3_i32 = arith.constant 3 : i32
    %115 = vector.broadcast %c3_i32 : i32 to vector<1x128xi32>
    %116 = arith.cmpi eq, %101, %115 : vector<1x128xi32>
    %117 = vector.broadcast %43 : f32 to vector<1x128xf32>
    %118 = arith.select %116, %117, %114 : vector<1x128xi1>, vector<1x128xf32>
    %c4_i32 = arith.constant 4 : i32
    %119 = vector.broadcast %c4_i32 : i32 to vector<1x128xi32>
    %120 = arith.cmpi eq, %101, %119 : vector<1x128xi32>
    %121 = vector.broadcast %55 : f32 to vector<1x128xf32>
    %122 = arith.select %120, %121, %118 : vector<1x128xi1>, vector<1x128xf32>
    %c5_i32 = arith.constant 5 : i32
    %123 = vector.broadcast %c5_i32 : i32 to vector<1x128xi32>
    %124 = arith.cmpi eq, %101, %123 : vector<1x128xi32>
    %125 = vector.broadcast %100 : f32 to vector<1x128xf32>
    %126 = arith.select %124, %125, %122 : vector<1x128xi1>, vector<1x128xf32>
    %c0_24 = arith.constant 0 : index
    %c0_25 = arith.constant 0 : index
    %127 = vector.load %arg3[%c0_24, %c0_25] : memref<1x128xf32, #tpu.memory_space<vmem>>, vector<1x128xf32>
    tpu.vector_store %arg3[%c0_24, %c0_25], %126 {strides = array<i32>} : memref<1x128xf32, #tpu.memory_space<vmem>>, vector<1x128xf32>,
    return
  }
}

</mosaic_0001>

<bundles_post_ra>
// kernel: custom_loss_forward.1
= control target key start
LH: loop header
LB: loop body
LE: loop exit
PB: predicated region body
PF: predicated region fallthrough
CT: control target
= control target key end

     0   :  { %v544_v0 = vmov 1   ;;  %v545_v1 = vmov 0   ;;  %v546_v6 = vmov 2   ;;  %vm119_vm0 = vcmask 261120   ;;  %s727_s1 = inlined_call_operand.vmem [shape: f32[32,6], index: 1, kind: input, shape index: {}]   ;;  %s728_s2 = inlined_call_operand.vmem [shape: f32[32,32], index: 2, kind: input, shape index: {}]   ;;  %s729_s0 = inlined_call_operand.vmem [shape: f32[3,128], index: 0, kind: input, shape index: {}]   ;;  %s730_s3 = inlined_call_operand.vmem [shape: f32[1,128], index: 3, kind: output, shape index: {}]  }
   0x1   :  { %511 = vset.pattern.permute.xlu1 %v544_v0  ;;  %510 = vset.pattern.permute.xlu0 %v545_v1  ;;  %v574_v2 = vld [vmem:[%s727_s1] sm:$0xff]  ;;  %v581_v3 = vld [vmem:[%s727_s1 + $0x8] sm:$0xff]  ;;  %v588_v4 = vld [vmem:[%s727_s1 + $0x10] sm:$0xff]  ;;  %v547_v9 = vmov 3   ;;  %v548_v10 = vmov 4   ;;  %v549_v11 = vmov 5   ;;  %v43_v12 = vlaneseq }
   0x2   :  { %52 = vperm.xlu1 %511, %v574_v2   ;;  %25 = vperm.xlu0 %510, %v574_v2   ;;  %v593_v5 = vld [vmem:[%s727_s1 + $0x18] sm:$0xff]  ;;  %v606_v7 = vld [vmem:[%s728_s2] sm:$0xff]  ;;  %v611_v8 = vld [vmem:[%s728_s2 + $0x10] sm:$0xff]  ;;  %vm317_vm1 = vcmask 15360   ;;  %vm264_vm7 = vcmask 1040384   ;;  %vm389_vm8 = vcmask 7168  }
   0x3   :  { %467 = vmatprep.mubr.msk.f32.mxu0 %vm119_vm0, %v606_v7  ;;  %470 = vmatprep.mubr.msk.f32.mxu1 %vm119_vm0, %v611_v8  ;;  %v44_v15 = vshrl.u32 %v43_v12, 7  ;;  %v630_v20 = vld [vmem:[%s729_s0] sm:$0x7]  ;;  %v20_v53 = vld [vmem:[%s728_s2 + $0x8] sm:$0xff]  ;;  %v640_v54 = vld [vmem:[%s728_s2 + $0x18] sm:$0xff]  ;;  %v343_v55 = vmul.f32 %v606_v7, %v606_v7  ;;  %v345_v56 = vmul.f32 %v611_v8, %v611_v8  ;;  %s550_s2 = smov 124  }
   0x4   :  { %v344_v57 = vmul.f32 %v20_v53, %v20_v53 }
   0x5   :  { %v69_v18 = vsub.s32 1, %v44_v15  ;;  %v45_v19 = vsub.s32 0, %v44_v15  ;;  %v347_v58 = vsel %vm119_vm0, %v343_v55, 0.0  ;;  %v350_v59 = vsel %vm119_vm0, %v345_v56, 0.0 }
   0x6   :  { %56 = vperm.xlu1 %511, %v581_v3   ;;  %30 = vperm.xlu0 %510, %v581_v3   ;;  %v348_v60 = vsel %vm119_vm0, %v344_v57, 0.0 }
   0x7   :  { %v70_v23 = vrot.slane %v630_v20, %v69_v18  ;;  %v46_v24 = vrot.slane %v630_v20, %v45_v19  ;;  %v349_v61 = vadd.f32 %v348_v60, %v347_v58 }
   0x9   :  { %v652_v62 = vadd.f32 %v350_v59, %v349_v61 }
   0xa   :  { %512 = vset.pattern.permute.xlu1 %v545_v1  ;;  %35 = vperm.xlu0 %510, %v588_v4  }
   0xb   :  { %40 = vperm.xlu1 %512, %v593_v5  }
   0xe   :  { %513 = vset.pattern.permute.xlu0 %v544_v0 }
   0xf   :  { %514 = vset.pattern.permute.xlu1 %v544_v0  ;;  %60 = vperm.xlu0 %513, %v588_v4  }
  0x10   :  { %64 = vperm.xlu1 %514, %v593_v5  }
  0x13   :  { %516 = vset.pattern.permute.xlu0 %v546_v6 }
  0x14   :  { %515 = vset.pattern.permute.xlu1 %v546_v6  ;;  %84 = vperm.xlu0 %516, %v581_v3  }
  0x15   :  { %80 = vperm.xlu1 %515, %v574_v2  }
  0x18   :  { %517 = vset.pattern.permute.xlu0 %v547_v9 }
  0x19   :  { %88 = vperm.xlu1 %515, %v588_v4   ;;  %104 = vperm.xlu0 %517, %v574_v2  }
  0x1d   :  { %92 = vperm.xlu1 %515, %v593_v5   ;;  %116 = vperm.xlu0 %517, %v593_v5  }
  0x21   :  { %518 = vset.pattern.permute.xlu1 %v547_v9  ;;  %520 = vset.pattern.permute.xlu0 %v548_v10 }
  0x22   :  { %108 = vperm.xlu1 %518, %v581_v3   ;;  %226 = vperm.xlu0 %520, %v581_v3  }
  0x26   :  { %112 = vperm.xlu1 %518, %v588_v4   ;;  %521 = vset.pattern.permute.xlu0 %v549_v11 }
  0x27   :  { %251 = vperm.xlu0 %521, %v574_v2  }
  0x2a   :  { %519 = vset.pattern.permute.xlu1 %v548_v10 }
  0x2b   :  { %222 = vperm.xlu1 %519, %v574_v2  }
  0x2f   :  { %230 = vperm.xlu1 %519, %v588_v4  }
  0x33   :  { %234 = vperm.xlu1 %519, %v593_v5  }
  0x81   :  { %v53_v13 = vpop.permute.xlu1 %52  ;;  %v26_v14 = vpop.permute.xlu0 %25 }
  0x82   :  { %v71_v28 = vmul.f32 %v70_v23, %v53_v13  ;;  %v47_v29 = vmul.f32 %v46_v24, %v26_v14 }
  0x84   :  { %v75_v33 = vadd.f32 %v71_v28, %v47_v29 }
  0x85   :  { %v57_v16 = vpop.permute.xlu1 %56  ;;  %v31_v17 = vpop.permute.xlu0 %30 }
  0x86   :  { %v72_v25 = vmul.f32 %v70_v23, %v57_v16  ;;  %v48_v26 = vmul.f32 %v46_v24, %v31_v17 }
  0x88   :  { %v76_v31 = vadd.f32 %v72_v25, %v48_v26 }
  0x89   :  { %v36_v21 = vpop.permute.xlu0 %35 }
  0x8a   :  { %v41_v22 = vpop.permute.xlu1 %40  ;;  %v49_v38 = vmul.f32 %v46_v24, %v36_v21 }
  0x8b   :  { %v50_v42 = vmul.f32 %v46_v24, %v41_v22 }
  0x8e   :  { %v61_v27 = vpop.permute.xlu0 %60 }
  0x8f   :  { %v65_v30 = vpop.permute.xlu1 %64  ;;  %v73_v34 = vmul.f32 %v70_v23, %v61_v27 }
  0x90   :  { %v74_v39 = vmul.f32 %v70_v23, %v65_v30 }
  0x91   :  { %v77_v41 = vadd.f32 %v73_v34, %v49_v38  ;;  %v659_v38 = vand.u32 127, %v43_v12  ;;  %v316_v12 = vmul.f32 %v593_v5, %v593_v5 }
  0x92   :  { %v78_v44 = vadd.f32 %v74_v39, %v50_v42 }
  0x93   :  { %v85_v32 = vpop.permute.xlu0 %84  ;;  %vm278_vm2 = vcmp.ge.s32.totalorder %v659_v38, 32  ;;  %vm279_vm3 = vcmp.lt.s32.totalorder %v659_v38, 64  ;;  %vm262_vm5 = vcmp.lt.s32.totalorder %v659_v38, 32  ;;  %vm295_vm6 = vcmp.ge.s32.totalorder %v659_v38, 64 }
  0x94   :  { %v96_v35 = vadd.f32 %v85_v32, %v76_v31  ;;  %v81_v36 = vpop.permute.xlu1 %80  ;;  %vm280_vm4 = vmand %vm278_vm2, %vm279_vm3  ;;  %vm424_vm15 = vcmp.eq.s32.totalorder %v659_v38, 0  ;;  %vm433_vm2 = vcmp.eq.s32.totalorder %v659_v38, 3  ;;  %vm436_vm3 = vcmp.eq.s32.totalorder %v659_v38, 4 }
  0x95   :  { %v95_v37 = vadd.f32 %v81_v36, %v75_v33  ;;  %v314_v36 = vmul.f32 %v581_v3, %v581_v3 }
  0x96   :  { %522 = vtanh.f32 %v96_v35  ;;  %v313_v35 = vmul.f32 %v574_v2, %v574_v2  ;;  %v258_v2 = vrot.slane %v630_v20, 2  ;;  %v323_v20 = vsel %vm317_vm1, %v316_v12, 0.0 }
  0x97   :  { %524 = vtanh.f32 %v95_v37 }
  0x98   :  { %v89_v40 = vpop.permute.xlu1 %88  ;;  %v105_v0 = vpop.permute.xlu0 %104  ;;  %v318_v42 = vsel %vm317_vm1, %v313_v35, 0.0 }
  0x99   :  { %v97_v43 = vadd.f32 %v89_v40, %v77_v41  ;;  %v315_v41 = vmul.f32 %v588_v4, %v588_v4 }
  0x9b   :  { %526 = vtanh.f32 %v97_v43  ;;  %v319_v43 = vsel %vm317_vm1, %v314_v36, 0.0 }
  0x9c   :  { %v93_v45 = vpop.permute.xlu1 %92  ;;  %v117_v6 = vpop.permute.xlu0 %116  ;;  %v320_v3 = vadd.f32 %v319_v43, %v318_v42 }
  0x9d   :  { %v98_v46 = vadd.f32 %v93_v45, %v78_v44 }
  0x9f   :  { %528 = vtanh.f32 %v98_v46  ;;  %v321_v46 = vsel %vm317_vm1, %v315_v41, 0.0  ;;  %vm430_vm1 = vcmp.eq.s32.totalorder %v659_v38, 2 }
  0xa0   :  { %v523_v47 = vpop.eup %522 }
  0xa1   :  { %v525_v48 = vpop.eup %524  ;;  %v109_v63 = vpop.permute.xlu1 %108 }
  0xa2   :  { %v473_v49 = vpack.c.bf16 %v523_v47, %v525_v48  ;;  %v227_v17 = vpop.permute.xlu0 %226 }
  0xa4   :  { %474 = vmatprep.subr.bf16.mxu0 %v473_v49  ;;  %481 = vmatprep.subr.bf16.mxu1 %v473_v49 }
  0xa5   :  { %476 = vmatpush3.bf16.msra.mxu0 %v473_v49  ;;  %483 = vmatpush3.bf16.msra.mxu1 %v473_v49  ;;  %v527_v50 = vpop.eup %526  ;;  %v113_v1 = vpop.permute.xlu1 %112  ;;  %v322_v49 = vadd.f32 %v321_v46, %v320_v3 }
  0xa6   :  { %v252_v40 = vpop.permute.xlu0 %251 }
  0xa7   :  { %v324_v55 = vadd.f32 %v323_v20, %v322_v49 }
  0xa9   :  { %v529_v51 = vpop.eup %528 }
  0xaa   :  { %v477_v52 = vpack.c.bf16 %v529_v51, %v527_v50  ;;  %v223_v16 = vpop.permute.xlu1 %222  ;;  %v346_v50 = vmul.f32 %v640_v54, %v640_v54 }
  0xac   :  { %478 = vmatprep.subr.bf16.mxu0 %v477_v52  ;;  %482 = vmatprep.subr.bf16.mxu1 %v477_v52  ;;  %v352_v57 = vsel %vm119_vm0, %v346_v50, 0.0 }
  0xad   :  { %480 = vmatpush3.bf16.msra.mxu0 %v477_v52  ;;  %484 = vmatpush3.bf16.msra.mxu1 %v477_v52  ;;  %v353_v59 = vadd.f32 %v352_v57, %v652_v62 }
  0xae   :  { %v231_v19 = vpop.permute.xlu1 %230 }
  0xb0   :  { %468 = vmatmul.mubr.msk.f32.vlgmr.msra.gmra.mrb[0].mxu0 %vm119_vm0, %v20_v53  ;;  %471 = vmatmul.mubr.msk.f32.vlgmr.msra.gmra.mrb[0].mxu1 %vm119_vm0, %v640_v54  ;;  %vm427_vm0 = vcmp.eq.s32.totalorder %v659_v38, 1 }
  0xb2   :  { %v235_v28 = vpop.permute.xlu1 %234 }
 0x183   :  { %v469_v9 = vpop.f32.mrb[0].mxu0  ;;  %v472_v10 = vpop.f32.mrb[0].mxu1 }
 0x184   :  { %v204_v7 = vadd.f32 %v469_v9, %v109_v63  ;;  %v198_v11 = vpop.f32.mrb[1].mxu0  ;;  %v208_v13 = vpop.f32.mrb[1].mxu1  ;;  %v214_v15 = vadd.f32 %v472_v10, %v117_v6 }
 0x185   :  { %v199_v8 = vadd.f32 %v198_v11, %v105_v0  ;;  %v209_v14 = vadd.f32 %v208_v13, %v113_v1 }
 0x186   :  { %530 = vtanh.f32 %v204_v7 }
 0x187   :  { %532 = vtanh.f32 %v199_v8 }
 0x188   :  { %534 = vtanh.f32 %v209_v14 }
 0x189   :  { %536 = vtanh.f32 %v214_v15 }
 0x190   :  { %v531_v18 = vpop.eup %530 }
 0x191   :  { %v238_v21 = vmul.f32 %v531_v18, %v227_v17  ;;  %v533_v22 = vpop.eup %532 }
 0x192   :  { %v535_v23 = vpop.eup %534  ;;  %v237_v24 = vmul.f32 %v533_v22, %v223_v16 }
 0x193   :  { %v537_v25 = vpop.eup %536  ;;  %v239_v26 = vmul.f32 %v535_v23, %v231_v19 }
 0x194   :  { %v241_v27 = vadd.f32 %v238_v21, %v237_v24  ;;  %v240_v29 = vmul.f32 %v537_v25, %v235_v28 }
 0x196   :  { %v242_v30 = vadd.f32 %v241_v27, %v239_v26 }
 0x198   :  { %v243_v31 = vadd.f32 %v242_v30, %v240_v29 }
 0x19a   :  { %v244_v32 = vrot.slane %v243_v31, 4 }
 0x19c   :  { %v245_v33 = vadd.f32 %v244_v32, %v243_v31 }
 0x19e   :  { %v246_v34 = vrot.slane %v245_v33, 2 }
 0x1a0   :  { %v247_v37 = vadd.f32 %v246_v34, %v245_v33 }
 0x1a2   :  { %v248_v39 = vrot.slane %v247_v37, 1 }
 0x1a4   :  { %v249_v44 = vadd.f32 %v248_v39, %v247_v37 }
 0x1a6   :  { %v254_v45 = vadd.f32 %v252_v40, %v249_v44 }
 0x1a8   :  { %v260_v47 = vsub.f32 %v254_v45, %v258_v2  ;;  %v298_v48 = vmul.f32 %v254_v45, %v254_v45 }
 0x1aa   :  { %v261_v4 = vmul.f32 %v260_v47, %v260_v47  ;;  %v299_v56 = vsel %vm295_vm6, %v298_v48, 0.0 }
 0x1ab   :  { %v300_v58 = vsel %vm264_vm7, %v299_v56, 0.0 }
 0x1ac   :  { %v281_v51 = vsel %vm280_vm4, %v261_v4, 0.0  ;;  %v263_v52 = vsel %vm262_vm5, %v261_v4, 0.0  ;;  %vm439_vm4 = vcmp.eq.s32.totalorder %v659_v38, 5 }
 0x1ad   :  { %v282_v5 = vsel %vm264_vm7, %v281_v51, 0.0  ;;  %v265_v53 = vsel %vm264_vm7, %v263_v52, 0.0 }
 0x1ae   :  { %283 = vadd.xlane.f32.xlu0 %v282_v5  ;;  %266 = vadd.xlane.f32.xlu1 %v265_v53 }
 0x1b2   :  { %325 = vadd.xlane.f32.xlu0 %v324_v55  ;;  %301 = vadd.xlane.f32.xlu1 %v300_v58 }
 0x1b6   :  { %354 = vadd.xlane.f32.xlu1 %v353_v59 }
 0x1c7   :  { %379 = vrot.lane.b32.xlu1 %v314_v36, %s550_s2 }
 0x1c8   :  { %377 = vrot.lane.b32.xlu0 %v313_v35, %s550_s2 }
 0x1cb   :  { %381 = vrot.lane.b32.xlu1 %v315_v41, %s550_s2 }
 0x1cc   :  { %383 = vrot.lane.b32.xlu0 %v316_v12, %s550_s2 }
 0x23b   :  { %v284_v54 = vpop.xlane.xlu0 %283  ;;  %v267_v60 = vpop.xlane.xlu1 %266 }
 0x23c   :  { %v285_v61 = vrot.slane %v284_v54, 4  ;;  %v268_v63 = vrot.slane %v267_v60, 4 }
 0x23e   :  { %v286_v0 = vadd.f32 %v285_v61, %v284_v54  ;;  %v269_v1 = vadd.f32 %v268_v63, %v267_v60 }
 0x23f   :  { %v326_v6 = vpop.xlane.xlu0 %325  ;;  %v302_v9 = vpop.xlane.xlu1 %301 }
 0x240   :  { %v287_v10 = vrot.slane %v286_v0, 2  ;;  %v270_v7 = vrot.slane %v269_v1, 2  ;;  %v327_v11 = vrot.slane %v326_v6, 4  ;;  %v303_v13 = vrot.slane %v302_v9, 4 }
 0x242   :  { %v328_v8 = vadd.f32 %v327_v11, %v326_v6  ;;  %v304_v62 = vadd.f32 %v303_v13, %v302_v9  ;;  %v271_v14 = vadd.f32 %v270_v7, %v269_v1  ;;  %v288_v15 = vadd.f32 %v287_v10, %v286_v0 }
 0x243   :  { %v355_v16 = vpop.xlane.xlu1 %354  ;;  %v378_v19 = vpop.permute.xlu0 %377 }
 0x244   :  { %v329_v17 = vrot.slane %v328_v8, 2  ;;  %v305_v18 = vrot.slane %v304_v62, 2  ;;  %v272_v21 = vrot.slane %v271_v14, 1  ;;  %v289_v22 = vrot.slane %v288_v15, 1 }
 0x245   :  { %v390_v28 = vsel %vm389_vm8, %v378_v19, 0.0  ;;  %v356_v42 = vrot.slane %v355_v16, 4 }
 0x246   :  { %v306_v23 = vadd.f32 %v305_v18, %v304_v62  ;;  %v330_v24 = vadd.f32 %v329_v17, %v328_v8  ;;  %v273_v26 = vadd.f32 %v272_v21, %v271_v14  ;;  %v290_v27 = vadd.f32 %v289_v22, %v288_v15 }
 0x247   :  { %v380_v25 = vpop.permute.xlu1 %379  ;;  %v384_v32 = vpop.permute.xlu0 %383  ;;  %v357_v43 = vadd.f32 %v356_v42, %v355_v16 }
 0x248   :  { %v391_v29 = vsel %vm389_vm8, %v380_v25, 0.0  ;;  %v307_v30 = vrot.slane %v306_v23, 1  ;;  %v331_v31 = vrot.slane %v330_v24, 1  ;;  %485 = vpush %v273_v26  ;;  %v395_v39 = vsel %vm389_vm8, %v384_v32, 0.0 }
 0x249   :  { %487 = vpush %v290_v27  ;;  %v392_v35 = vadd.f32 %v391_v29, %v390_v28  ;;  %v358_v2 = vrot.slane %v357_v43, 2 }
 0x24a   :  { %v308_v33 = vadd.f32 %v307_v30, %v306_v23  ;;  %v332_v34 = vadd.f32 %v331_v31, %v330_v24 }
 0x24b   :  { %v382_v36 = vpop.permute.xlu1 %381  ;;  %v359_v45 = vadd.f32 %v358_v2, %v357_v43 }
 0x24c   :  { %v393_v37 = vsel %vm389_vm8, %v382_v36, 0.0  ;;  %489 = vpush %v308_v33 }
 0x24d   :  { %v394_v40 = vadd.f32 %v393_v37, %v392_v35  ;;  %491 = vpush %v332_v34  ;;  %v360_v12 = vrot.slane %v359_v45, 1 }
 0x24f   :  { %v396_v41 = vadd.f32 %v395_v39, %v394_v40  ;;  %v361_v49 = vadd.f32 %v360_v12, %v359_v45 }
 0x251   :  { %397 = vadd.xlane.f32.xlu1 %v396_v41 }
 0x279   :  { %s682_s28 = spop %485 }
 0x27a   :  { %s277_s29 = smul.f32 0.03125, %s682_s28  ;;  %s685_s30 = spop %487 }
 0x27b   :  { %s294_s4 = smul.f32 0.03125, %s685_s30 }
 0x27c   :  { %v434_v62 = vstv %s277_s29 }
 0x27d   :  { %s688_s5 = spop %489  ;;  %s694_s6 = sadd.f32 %s294_s4, %s277_s29  ;;  %v437_v15 = vstv %s294_s4 }
 0x27e   :  { %s312_s7 = smul.f32 0.015625, %s688_s5  ;;  %s492_s8 = spop %491 }
 0x27f   :  { %v334_v44 = vstv %s492_s8  ;;  %p421_p0 = scmp.ne.f32.partialorder %s694_s6, %s694_s6  ;;  %v428_v7 = vstv %s694_s6 }
 0x280   :  { %s699_s9 = smul.f32 2.0, %s312_s7  ;;  %538 = vrsqrt.f32 %v334_v44  ;;  %vm337_vm9 = vcmp.eq.f32.partialorder %v334_v44, inf  ;;  %v340_v47 = vand.u32 2147483648, %v334_v44  ;;  %vm339_vm10 = vcmp.eq.f32.partialorder %v334_v44, 0.0 }
 0x281   :  { %s422_s19 = scalar_select %p421_p0, 1, 0  ;;  %v431_v13 = vstv %s312_s7 }
 0x282   :  { %s418_s10 = sadd.f32 %s699_s9, %s694_s6 }
 0x283   :  { %s423_s20 = scvt.s32.f32 %s422_s19 }
 0x285   :  { %v440_v17 = vstv %s423_s20 }
 0x28a   :  { %v539_v3 = vpop.eup %538 }
 0x28b   :  { %v336_v46 = vmul.f32 %v539_v3, %v334_v44 }
 0x28d   :  { %v338_v4 = vsel %vm337_vm9, %v334_v44, %v336_v46 }
 0x28e   :  { %v341_v48 = vsel %vm339_vm10, %v340_v47, %v338_v4 }
 0x28f   :  { %493 = vpush %v341_v48 }
 0x290   :  { %495 = vpush %v361_v49 }
 0x2c0   :  { %s703_s11 = spop %493 }
 0x2c1   :  { %s496_s12 = spop %495 }
 0x2c2   :  { %v363_v20 = vstv %s496_s12 }
 0x2c3   :  { %540 = vrsqrt.f32 %v363_v20  ;;  %vm366_vm11 = vcmp.eq.f32.partialorder %v363_v20, inf  ;;  %v369_v52 = vand.u32 2147483648, %v363_v20  ;;  %vm368_vm12 = vcmp.eq.f32.partialorder %v363_v20, 0.0 }
 0x2cd   :  { %v541_v50 = vpop.eup %540 }
 0x2ce   :  { %v365_v51 = vmul.f32 %v541_v50, %v363_v20 }
 0x2d0   :  { %v367_v5 = vsel %vm366_vm11, %v363_v20, %v365_v51 }
 0x2d1   :  { %v370_v53 = vsel %vm368_vm12, %v369_v52, %v367_v5 }
 0x2d2   :  { %497 = vpush %v370_v53 }
 0x2de   :  { %v398_v55 = vpop.xlane.xlu1 %397 }
 0x2df   :  { %v399_v56 = vrot.slane %v398_v55, 4 }
 0x2e1   :  { %v400_v57 = vadd.f32 %v399_v56, %v398_v55 }
 0x2e3   :  { %v401_v58 = vrot.slane %v400_v57, 2 }
 0x2e5   :  { %v402_v59 = vadd.f32 %v401_v58, %v400_v57 }
 0x2e7   :  { %v403_v54 = vrot.slane %v402_v59, 1 }
 0x2e9   :  { %v404_v60 = vadd.f32 %v403_v54, %v402_v59 }
 0x2eb   :  { %499 = vpush %v404_v60 }
 0x303   :  { %s498_s13 = spop %497 }
 0x304   :  { %s372_s15 = sadd.f32 %s498_s13, %s703_s11 }
 0x31c   :  { %s500_s14 = spop %499 }
 0x31d   :  { %v406_v61 = vstv %s500_s14 }
 0x31e   :  { %542 = vrsqrt.f32 %v406_v61  ;;  %vm409_vm13 = vcmp.eq.f32.partialorder %v406_v61, inf  ;;  %v412_v1 = vand.u32 2147483648, %v406_v61  ;;  %vm411_vm14 = vcmp.eq.f32.partialorder %v406_v61, 0.0 }
 0x328   :  { %v543_v63 = vpop.eup %542 }
 0x329   :  { %v408_v0 = vmul.f32 %v543_v63, %v406_v61 }
 0x32b   :  { %v410_v6 = vsel %vm409_vm13, %v406_v61, %v408_v0 }
 0x32c   :  { %v413_v9 = vsel %vm411_vm14, %v412_v1, %v410_v6 }
 0x32d   :  { %501 = vpush %v413_v9 }
 0x35e   :  { %s502_s16 = spop %501 }
 0x35f   :  { %s415_s17 = sadd.f32 %s502_s16, %s372_s15 }
 0x361   :  { %s419_s18 = smul.f32 0.0001, %s415_s17 }
 0x363   :  { %s420_s1 = sadd.f32 %s419_s18, %s418_s10 }
 0x365   :  { %v425_v10 = vstv %s420_s1 }
 0x366   :  { %v426_v11 = vsel %vm424_vm15, %v425_v10, 0.0 }
 0x367   :  { %v429_v8 = vsel %vm427_vm0, %v428_v7, %v426_v11 }
 0x368   :  { %v432_v14 = vsel %vm430_vm1, %v431_v13, %v429_v8 }
 0x369   :  { %v435_v16 = vsel %vm433_vm2, %v434_v62, %v432_v14 }
 0x36a   :  { %v438_v18 = vsel %vm436_vm3, %v437_v15, %v435_v16 }
 0x36b   :  { %v441_v19 = vsel %vm439_vm4, %v440_v17, %v438_v18 }
 0x36c   :  { %442 = vst [vmem:[%s730_s3] sm:$0x1] %v441_v19 }

</bundles_post_ra>
